<compile_context>
chip_gen: v5e
topology: v5e:2x2
jax: 0.10.0
libtpu: 0.0.40
codegen_flags: <defaults>
</compile_context>

<pallas_src>
import functools
import math

import jax
import jax.numpy as jnp
from jax.experimental import pallas as pl
from jax.experimental.pallas import tpu as pltpu


_SQRT_2 = math.sqrt(2.0)


# ----------------------------------------------------------------------------
# in-kernel helpers (operate on f32 jnp values)
# ----------------------------------------------------------------------------
def _layernorm(x, g, b, eps):
    mean = jnp.mean(x, axis=-1, keepdims=True)
    cen = x - mean
    var = jnp.mean(cen * cen, axis=-1, keepdims=True)
    return cen * jax.lax.rsqrt(var + eps) * g + b


def _erf(x):
    # Abramowitz & Stegun 7.1.26 polynomial (max abs error ~1.5e-7): exact-GELU
    # semantics with only mul/add/exp (no erf primitive needed in Mosaic).
    a1, a2, a3, a4, a5 = (0.254829592, -0.284496736, 1.421413741,
                          -1.453152027, 1.061405429)
    p = 0.3275911
    ax = jnp.abs(x)
    t = 1.0 / (1.0 + p * ax)
    poly = ((((a5 * t + a4) * t + a3) * t + a2) * t + a1) * t
    y = 1.0 - poly * jnp.exp(-ax * ax)
    return jnp.where(x >= 0, y, -y)


def _gelu_exact(x):
    return 0.5 * x * (1.0 + _erf(x / _SQRT_2))


# ----------------------------------------------------------------------------
# fused AttentionBlock kernel — one grid step == one batch row [L, E]
# ----------------------------------------------------------------------------
def _attention_block_kernel(x_ref, ln1_g_ref, ln1_b_ref,
                            wq_ref, wk_ref, wv_ref, bq_ref, bk_ref, bv_ref,
                            wo_ref, bo_ref, ln2_g_ref, ln2_b_ref,
                            w1_ref, b1_ref, w2_ref, b2_ref,
                            o_ref, *, num_heads, eps):
    H = num_heads
    L, E = x_ref.shape[1], x_ref.shape[2]
    dh = E // H
    scale = 1.0 / math.sqrt(dh)
    f32, bf16 = jnp.float32, jnp.bfloat16

    x = x_ref[0]                                                  # [L, E] f32

    # ---- LN1 + per-head QKV projections (head-batched, bf16 MXU operands) -------
    h1 = _layernorm(x, ln1_g_ref[...], ln1_b_ref[...], eps)
    h1b = jnp.broadcast_to(h1.astype(bf16), (H, L, E))            # [H, L, E] bf16

    proj = (((2,), (1,)), ((0,), (0,)))                           # contract E, batch H
    q = jax.lax.dot_general(h1b, wq_ref[...], proj,
                            preferred_element_type=f32) + bq_ref[...]   # [H, L, dh]
    k = jax.lax.dot_general(h1b, wk_ref[...], proj,
                            preferred_element_type=f32) + bk_ref[...]
    v = jax.lax.dot_general(h1b, wv_ref[...], proj,
                            preferred_element_type=f32) + bv_ref[...]
    q = (q * scale).astype(bf16)
    k = k.astype(bf16)
    v = v.astype(bf16)

    # ---- softmax(q k^T) v for all heads at once ('hld,hmd->hlm') ---------------
    s = jax.lax.dot_general(q, k, (((2,), (2,)), ((0,), (0,))),
                            preferred_element_type=f32)           # [H, L, L] f32
    s = s - jnp.max(s, axis=-1, keepdims=True)
    p = jnp.exp(s)
    p = p * pl.reciprocal(jnp.sum(p, axis=-1, keepdims=True), approx=True)

    o_h = jax.lax.dot_general(p.astype(bf16), v,
                              (((2,), (1,)), ((0,), (0,))),
                              preferred_element_type=f32)          # [H, L, dh]

    # ---- output projection (head-batched) + residual -----------------------------
    per_head = jax.lax.dot_general(o_h.astype(bf16), wo_ref[...],
                                   (((2,), (1,)), ((0,), (0,))),
                                   preferred_element_type=f32)     # [H, L, E]
    x1 = x + jnp.sum(per_head, axis=0) + bo_ref[...]               # [L, E] f32

    # ---- LN2 + MLP (Linear -> exact GELU -> Linear) + residual -------------------
    # TODO(synk): nn.Dropout(p=0.0) is the identity in eval mode; omitted.
    h2 = _layernorm(x1, ln2_g_ref[...], ln2_b_ref[...], eps)
    m1 = jnp.dot(h2.astype(bf16), w1_ref[...],
                 preferred_element_type=f32) + b1_ref[...]         # [L, Hd] f32
    g = _gelu_exact(m1)
    m2 = jnp.dot(g.astype(bf16), w2_ref[...],
                 preferred_element_type=f32) + b2_ref[...]         # [L, E] f32

    o_ref[0] = (x1 + m2).astype(o_ref.dtype)


def attention_block(x, kp, num_heads, eps=1e-5):
    """x: [L, B, E] (seq-first, like nn.MultiheadAttention batch_first=False)."""
    L, B, E = x.shape
    # Batch-major layout so each grid step owns one contiguous [L, E] slab.
    # TODO(synk): callers that already hold batch-major activations can skip these
    # two wrapper transposes entirely.
    xb = jnp.transpose(x, (1, 0, 2)).astype(jnp.float32)          # [B, L, E]

    kern = functools.partial(_attention_block_kernel, num_heads=num_heads, eps=eps)

    weights = (
        kp['ln1_g'], kp['ln1_b'],
        kp['wq'], kp['wk'], kp['wv'], kp['bq'], kp['bk'], kp['bv'],
        kp['wo'], kp['bo'],
        kp['ln2_g'], kp['ln2_b'],
        kp['w1'], kp['b1'], kp['w2'], kp['b2'],
    )

    def resident(a):   # full-array block, constant index_map -> fetched once, stays in VMEM
        return pl.BlockSpec(a.shape, lambda b, _n=a.ndim: (0,) * _n)

    row_spec = pl.BlockSpec((1, L, E), lambda b: (b, 0, 0))

    y = pl.pallas_call(
        kern,
        out_shape=jax.ShapeDtypeStruct((B, L, E), jnp.float32),
        grid_spec=pltpu.PrefetchScalarGridSpec(
            num_scalar_prefetch=0,
            grid=(B,),                                            # >= 2 parallel blocks
            in_specs=[row_spec] + [resident(a) for a in weights],
            out_specs=row_spec,
        ),
        compiler_params=pltpu.CompilerParams(
            dimension_semantics=("parallel",),
            vmem_limit_bytes=32 * 1024 * 1024),
    )(xb, *weights)
    return jnp.transpose(y, (1, 0, 2))


# ----------------------------------------------------------------------------
# plain-JAX reference (mirrors the PyTorch module, f32 / HIGHEST precision)
# ----------------------------------------------------------------------------
def attention_block_ref(x, p, num_heads, eps=1e-5):
    L, B, E = x.shape
    dh = E // num_heads
    hp = jax.lax.Precision.HIGHEST

    def ln(t, g, b):
        m = t.mean(-1, keepdims=True)
        v = ((t - m) ** 2).mean(-1, keepdims=True)
        return (t - m) / jnp.sqrt(v + eps) * g + b

    h = ln(x, p['ln1_g'], p['ln1_b'])
    qkv = jnp.einsum('lbe,fe->lbf', h, p['in_proj_w'], precision=hp) + p['in_proj_b']
    q, k, v = jnp.split(qkv, 3, axis=-1)
    q = q.reshape(L, B * num_heads, dh).transpose(1, 0, 2) * (dh ** -0.5)
    k = k.reshape(L, B * num_heads, dh).transpose(1, 0, 2)
    v = v.reshape(L, B * num_heads, dh).transpose(1, 0, 2)
    s = jnp.einsum('bld,bmd->blm', q, k, precision=hp)
    a = jax.nn.softmax(s, axis=-1)
    o = jnp.einsum('blm,bmd->bld', a, v, precision=hp)
    o = o.transpose(1, 0, 2).reshape(L, B, E)
    o = jnp.einsum('lbe,fe->lbf', o, p['out_proj_w'], precision=hp) + p['out_proj_b']
    x = x + o

    h = ln(x, p['ln2_g'], p['ln2_b'])
    h = jnp.einsum('lbe,fe->lbf', h, p['fc1_w'], precision=hp) + p['fc1_b']
    h = jax.nn.gelu(h, approximate=False)
    h = jnp.einsum('lbf,ef->lbe', h, p['fc2_w'], precision=hp) + p['fc2_b']
    return x + h


# ----------------------------------------------------------------------------
# deterministic parameter init (PyTorch layouts) + one-time kernel-layout prep
# ----------------------------------------------------------------------------
def init_torch_params(key, embed_dim, hidden_dim):
    E, Hd = embed_dim, hidden_dim
    keys = jax.random.split(key, 8)

    def nrm(k, shape, scale=0.02):
        return (scale * jax.random.normal(k, shape)).astype(jnp.float32)

    return dict(
        ln1_g=jnp.ones((E,), jnp.float32), ln1_b=jnp.zeros((E,), jnp.float32),
        in_proj_w=nrm(keys[0], (3 * E, E)), in_proj_b=nrm(keys[1], (3 * E,)),
        out_proj_w=nrm(keys[2], (E, E)), out_proj_b=nrm(keys[3], (E,)),
        ln2_g=jnp.ones((E,), jnp.float32), ln2_b=jnp.zeros((E,), jnp.float32),
        fc1_w=nrm(keys[4], (Hd, E)), fc1_b=nrm(keys[5], (Hd,)),
        fc2_w=nrm(keys[6], (E, Hd)), fc2_b=nrm(keys[7], (E,)),
    )


def prepare_kernel_params(tp, num_heads):
    """One-time layout plumbing: per-head weight slabs, pre-transposed, bf16 for MXU."""
    E = tp['out_proj_w'].shape[0]
    Hd = tp['fc1_w'].shape[0]
    dh = E // num_heads
    bf = jnp.bfloat16

    def per_head_in(w):  # [E, E] (out, in) -> [H, E, dh]
        return jnp.transpose(w.reshape(num_heads, dh, E), (0, 2, 1)).astype(bf)

    return dict(
        ln1_g=tp['ln1_g'].reshape(1, E), ln1_b=tp['ln1_b'].reshape(1, E),
        wq=per_head_in(tp['in_proj_w'][:E]),
        wk=per_head_in(tp['in_proj_w'][E:2 * E]),
        wv=per_head_in(tp['in_proj_w'][2 * E:]),
        bq=tp['in_proj_b'][:E].reshape(num_heads, 1, dh),
        bk=tp['in_proj_b'][E:2 * E].reshape(num_heads, 1, dh),
        bv=tp['in_proj_b'][2 * E:].reshape(num_heads, 1, dh),
        wo=tp['out_proj_w'].T.reshape(num_heads, dh, E).astype(bf),
        bo=tp['out_proj_b'].reshape(1, E),
        ln2_g=tp['ln2_g'].reshape(1, E), ln2_b=tp['ln2_b'].reshape(1, E),
        w1=tp['fc1_w'].T.astype(bf), b1=tp['fc1_b'].reshape(1, Hd),
        w2=tp['fc2_w'].T.astype(bf), b2=tp['fc2_b'].reshape(1, E),
    )


# ----------------------------------------------------------------------------
if __name__ == "__main__":
    embed_dim, hidden_dim, num_heads = 32, 64, 4
    seq_len, batch = 8, 2

    key = jax.random.PRNGKey(0)
    kparam_key, kx = jax.random.split(key)
    torch_params = init_torch_params(kparam_key, embed_dim, hidden_dim)
    kparams = prepare_kernel_params(torch_params, num_heads)
    x = jax.random.normal(kx, (seq_len, batch, embed_dim), dtype=jnp.float32)

    fwd = jax.jit(functools.partial(attention_block, num_heads=num_heads))
    out = jax.block_until_ready(fwd(x, kparams))
    ref = jax.block_until_ready(attention_block_ref(x, torch_params, num_heads))

    assert out.shape == (seq_len, batch, embed_dim)
    assert bool(jnp.all(jnp.isfinite(out)))
    max_err = float(jnp.max(jnp.abs(out - ref)))
    assert bool(jnp.allclose(out, ref, atol=5e-3, rtol=5e-3)), max_err
    print("KERNEL_OK")
</pallas_src>

<mosaic_0001>
module attributes {stable_mosaic.version = 11 : i64} {
  func.func @_attention_block_kernel(%arg0: i32, %arg1: memref<1x8x32xf32, #tpu.memory_space<vmem>>, %arg2: memref<1x32xf32, #tpu.memory_space<vmem>>, %arg3: memref<1x32xf32, #tpu.memory_space<vmem>>, %arg4: memref<4x32x8xbf16, #tpu.memory_space<vmem>>, %arg5: memref<4x32x8xbf16, #tpu.memory_space<vmem>>, %arg6: memref<4x32x8xbf16, #tpu.memory_space<vmem>>, %arg7: memref<4x1x8xf32, #tpu.memory_space<vmem>>, %arg8: memref<4x1x8xf32, #tpu.memory_space<vmem>>, %arg9: memref<4x1x8xf32, #tpu.memory_space<vmem>>, %arg10: memref<4x8x32xbf16, #tpu.memory_space<vmem>>, %arg11: memref<1x32xf32, #tpu.memory_space<vmem>>, %arg12: memref<1x32xf32, #tpu.memory_space<vmem>>, %arg13: memref<1x32xf32, #tpu.memory_space<vmem>>, %arg14: memref<32x64xbf16, #tpu.memory_space<vmem>>, %arg15: memref<1x64xf32, #tpu.memory_space<vmem>>, %arg16: memref<64x32xbf16, #tpu.memory_space<vmem>>, %arg17: memref<1x32xf32, #tpu.memory_space<vmem>>, %arg18: memref<1x8x32xf32, #tpu.memory_space<vmem>>) attributes {dimension_semantics = [#tpu.dimension_semantics<parallel>], iteration_bounds = array<i64: 2>, scalar_prefetch = 0 : i64, scratch_operands = 0 : i64, tpu.core_type = #tpu.core_type<tc>, window_params = [{transform_indices = @transform_0, window_bounds = array<i64: 1, 8, 32>}, {pipeline_mode = #tpu.pipeline_mode<synchronous>, transform_indices = @transform_1, window_bounds = array<i64: 1, 32>}, {pipeline_mode = #tpu.pipeline_mode<synchronous>, transform_indices = @transform_2, window_bounds = array<i64: 1, 32>}, {pipeline_mode = #tpu.pipeline_mode<synchronous>, transform_indices = @transform_3, window_bounds = array<i64: 4, 32, 8>}, {pipeline_mode = #tpu.pipeline_mode<synchronous>, transform_indices = @transform_4, window_bounds = array<i64: 4, 32, 8>}, {pipeline_mode = #tpu.pipeline_mode<synchronous>, transform_indices = @transform_5, window_bounds = array<i64: 4, 32, 8>}, {pipeline_mode = #tpu.pipeline_mode<synchronous>, transform_indices = @transform_6, window_bounds = array<i64: 4, 1, 8>}, {pipeline_mode = #tpu.pipeline_mode<synchronous>, transform_indices = @transform_7, window_bounds = array<i64: 4, 1, 8>}, {pipeline_mode = #tpu.pipeline_mode<synchronous>, transform_indices = @transform_8, window_bounds = array<i64: 4, 1, 8>}, {pipeline_mode = #tpu.pipeline_mode<synchronous>, transform_indices = @transform_9, window_bounds = array<i64: 4, 8, 32>}, {pipeline_mode = #tpu.pipeline_mode<synchronous>, transform_indices = @transform_10, window_bounds = array<i64: 1, 32>}, {pipeline_mode = #tpu.pipeline_mode<synchronous>, transform_indices = @transform_11, window_bounds = array<i64: 1, 32>}, {pipeline_mode = #tpu.pipeline_mode<synchronous>, transform_indices = @transform_12, window_bounds = array<i64: 1, 32>}, {pipeline_mode = #tpu.pipeline_mode<synchronous>, transform_indices = @transform_13, window_bounds = array<i64: 32, 64>}, {pipeline_mode = #tpu.pipeline_mode<synchronous>, transform_indices = @transform_14, window_bounds = array<i64: 1, 64>}, {pipeline_mode = #tpu.pipeline_mode<synchronous>, transform_indices = @transform_15, window_bounds = array<i64: 64, 32>}, {pipeline_mode = #tpu.pipeline_mode<synchronous>, transform_indices = @transform_16, window_bounds = array<i64: 1, 32>}, {transform_indices = @transform_17, window_bounds = array<i64: 1, 8, 32>}]} {
    %c0 = arith.constant 0 : index
    %c0_0 = arith.constant 0 : index
    %c0_1 = arith.constant 0 : index
    %0 = vector.load %arg1[%c0, %c0_0, %c0_1] : memref<1x8x32xf32, #tpu.memory_space<vmem>>, vector<1x8x32xf32>
    %1 = vector.shape_cast %0 : vector<1x8x32xf32> to vector<8x32xf32>
    %c0_2 = arith.constant 0 : index
    %c0_3 = arith.constant 0 : index
    %2 = vector.load %arg2[%c0_2, %c0_3] : memref<1x32xf32, #tpu.memory_space<vmem>>, vector<1x32xf32>
    %c0_4 = arith.constant 0 : index
    %c0_5 = arith.constant 0 : index
    %3 = vector.load %arg3[%c0_4, %c0_5] : memref<1x32xf32, #tpu.memory_space<vmem>>, vector<1x32xf32>
    %cst = arith.constant dense<0.000000e+00> : vector<8xf32>
    %4 = vector.multi_reduction <add>, %1, %cst [1] : vector<8x32xf32> to vector<8xf32>
    %5 = vector.shape_cast %4 : vector<8xf32> to vector<8x1xf32>
    %cst_6 = arith.constant 3.200000e+01 : f32
    %6 = vector.broadcast %cst_6 : f32 to vector<8x1xf32>
    %7 = arith.divf %5, %6 : vector<8x1xf32>
    %8 = vector.broadcast %7 : vector<8x1xf32> to vector<8x32xf32>
    %9 = arith.subf %1, %8 : vector<8x32xf32>
    %10 = arith.mulf %9, %9 : vector<8x32xf32>
    %cst_7 = arith.constant dense<0.000000e+00> : vector<8xf32>
    %11 = vector.multi_reduction <add>, %10, %cst_7 [1] : vector<8x32xf32> to vector<8xf32>
    %12 = vector.shape_cast %11 : vector<8xf32> to vector<8x1xf32>
    %cst_8 = arith.constant 3.200000e+01 : f32
    %13 = vector.broadcast %cst_8 : f32 to vector<8x1xf32>
    %14 = arith.divf %12, %13 : vector<8x1xf32>
    %cst_9 = arith.constant 9.99999974E-6 : f32
    %15 = vector.broadcast %cst_9 : f32 to vector<8x1xf32>
    %16 = arith.addf %14, %15 : vector<8x1xf32>
    %17 = math.rsqrt %16 : vector<8x1xf32>
    %18 = vector.broadcast %17 : vector<8x1xf32> to vector<8x32xf32>
    %19 = arith.mulf %9, %18 : vector<8x32xf32>
    %20 = vector.broadcast %2 : vector<1x32xf32> to vector<8x32xf32>
    %21 = arith.mulf %19, %20 : vector<8x32xf32>
    %22 = vector.broadcast %3 : vector<1x32xf32> to vector<8x32xf32>
    %23 = arith.addf %21, %22 : vector<8x32xf32>
    %24 = arith.truncf %23 : vector<8x32xf32> to vector<8x32xbf16>
    %25 = vector.shape_cast %24 : vector<8x32xbf16> to vector<1x8x32xbf16>
    %26 = vector.broadcast %25 : vector<1x8x32xbf16> to vector<4x8x32xbf16>
    %c0_10 = arith.constant 0 : index
    %c0_11 = arith.constant 0 : index
    %c0_12 = arith.constant 0 : index
    %27 = vector.load %arg4[%c0_10, %c0_11, %c0_12] : memref<4x32x8xbf16, #tpu.memory_space<vmem>>, vector<4x32x8xbf16>
    %cst_13 = arith.constant dense<0.000000e+00> : vector<4x8x8xf32>
    %28 = tpu.matmul %26, %27, %cst_13 {dimension_numbers = #tpu.dot_dimension_numbers<[2], [1], [1], [2], [0, 0, 0, 1, 1, 2], [0], [0]>} : vector<4x8x32xbf16>, vector<4x32x8xbf16>, vector<4x8x8xf32> -> vector<4x8x8xf32>
    %c0_14 = arith.constant 0 : index
    %c0_15 = arith.constant 0 : index
    %c0_16 = arith.constant 0 : index
    %29 = vector.load %arg7[%c0_14, %c0_15, %c0_16] : memref<4x1x8xf32, #tpu.memory_space<vmem>>, vector<4x1x8xf32>
    %30 = vector.broadcast %29 : vector<4x1x8xf32> to vector<4x8x8xf32>
    %31 = arith.addf %28, %30 : vector<4x8x8xf32>
    %c0_17 = arith.constant 0 : index
    %c0_18 = arith.constant 0 : index
    %c0_19 = arith.constant 0 : index
    %32 = vector.load %arg5[%c0_17, %c0_18, %c0_19] : memref<4x32x8xbf16, #tpu.memory_space<vmem>>, vector<4x32x8xbf16>
    %cst_20 = arith.constant dense<0.000000e+00> : vector<4x8x8xf32>
    %33 = tpu.matmul %26, %32, %cst_20 {dimension_numbers = #tpu.dot_dimension_numbers<[2], [1], [1], [2], [0, 0, 0, 1, 1, 2], [0], [0]>} : vector<4x8x32xbf16>, vector<4x32x8xbf16>, vector<4x8x8xf32> -> vector<4x8x8xf32>
    %c0_21 = arith.constant 0 : index
    %c0_22 = arith.constant 0 : index
    %c0_23 = arith.constant 0 : index
    %34 = vector.load %arg8[%c0_21, %c0_22, %c0_23] : memref<4x1x8xf32, #tpu.memory_space<vmem>>, vector<4x1x8xf32>
    %35 = vector.broadcast %34 : vector<4x1x8xf32> to vector<4x8x8xf32>
    %36 = arith.addf %33, %35 : vector<4x8x8xf32>
    %c0_24 = arith.constant 0 : index
    %c0_25 = arith.constant 0 : index
    %c0_26 = arith.constant 0 : index
    %37 = vector.load %arg6[%c0_24, %c0_25, %c0_26] : memref<4x32x8xbf16, #tpu.memory_space<vmem>>, vector<4x32x8xbf16>
    %cst_27 = arith.constant dense<0.000000e+00> : vector<4x8x8xf32>
    %38 = tpu.matmul %26, %37, %cst_27 {dimension_numbers = #tpu.dot_dimension_numbers<[2], [1], [1], [2], [0, 0, 0, 1, 1, 2], [0], [0]>} : vector<4x8x32xbf16>, vector<4x32x8xbf16>, vector<4x8x8xf32> -> vector<4x8x8xf32>
    %c0_28 = arith.constant 0 : index
    %c0_29 = arith.constant 0 : index
    %c0_30 = arith.constant 0 : index
    %39 = vector.load %arg9[%c0_28, %c0_29, %c0_30] : memref<4x1x8xf32, #tpu.memory_space<vmem>>, vector<4x1x8xf32>
    %40 = vector.broadcast %39 : vector<4x1x8xf32> to vector<4x8x8xf32>
    %41 = arith.addf %38, %40 : vector<4x8x8xf32>
    %cst_31 = arith.constant 0.353553385 : f32
    %42 = vector.broadcast %cst_31 : f32 to vector<4x8x8xf32>
    %43 = arith.mulf %31, %42 : vector<4x8x8xf32>
    %44 = arith.truncf %43 : vector<4x8x8xf32> to vector<4x8x8xbf16>
    %45 = arith.truncf %36 : vector<4x8x8xf32> to vector<4x8x8xbf16>
    %46 = arith.truncf %41 : vector<4x8x8xf32> to vector<4x8x8xbf16>
    %cst_32 = arith.constant dense<0.000000e+00> : vector<4x8x8xf32>
    %47 = tpu.matmul %44, %45, %cst_32 {dimension_numbers = #tpu.dot_dimension_numbers<[2], [2], [1], [1], [0, 0, 0, 1, 1, 1], [0], [0]>} : vector<4x8x8xbf16>, vector<4x8x8xbf16>, vector<4x8x8xf32> -> vector<4x8x8xf32>
    %cst_33 = arith.constant dense<0xFF800000> : vector<4x8xf32>
    %48 = vector.multi_reduction <maximumf>, %47, %cst_33 [2] : vector<4x8x8xf32> to vector<4x8xf32>
    %49 = vector.shape_cast %48 : vector<4x8xf32> to vector<4x8x1xf32>
    %50 = vector.broadcast %49 : vector<4x8x1xf32> to vector<4x8x8xf32>
    %51 = arith.subf %47, %50 : vector<4x8x8xf32>
    %52 = math.exp %51 : vector<4x8x8xf32>
    %cst_34 = arith.constant dense<0.000000e+00> : vector<4x8xf32>
    %53 = vector.multi_reduction <add>, %52, %cst_34 [2] : vector<4x8x8xf32> to vector<4x8xf32>
    %54 = vector.shape_cast %53 : vector<4x8xf32> to vector<4x8x1xf32>
    %55 = tpu.reciprocal %54 {approx = true} : vector<4x8x1xf32> -> vector<4x8x1xf32>
    %56 = vector.broadcast %55 : vector<4x8x1xf32> to vector<4x8x8xf32>
    %57 = arith.mulf %52, %56 : vector<4x8x8xf32>
    %58 = arith.truncf %57 : vector<4x8x8xf32> to vector<4x8x8xbf16>
    %cst_35 = arith.constant dense<0.000000e+00> : vector<4x8x8xf32>
    %59 = tpu.matmul %58, %46, %cst_35 {dimension_numbers = #tpu.dot_dimension_numbers<[2], [1], [1], [2], [0, 0, 0, 1, 1, 2], [0], [0]>} : vector<4x8x8xbf16>, vector<4x8x8xbf16>, vector<4x8x8xf32> -> vector<4x8x8xf32>
    %60 = arith.truncf %59 : vector<4x8x8xf32> to vector<4x8x8xbf16>
    %c0_36 = arith.constant 0 : index
    %c0_37 = arith.constant 0 : index
    %c0_38 = arith.constant 0 : index
    %61 = vector.load %arg10[%c0_36, %c0_37, %c0_38] : memref<4x8x32xbf16, #tpu.memory_space<vmem>>, vector<4x8x32xbf16>
    %cst_39 = arith.constant dense<0.000000e+00> : vector<4x8x32xf32>
    %62 = tpu.matmul %60, %61, %cst_39 {dimension_numbers = #tpu.dot_dimension_numbers<[2], [1], [1], [2], [0, 0, 0, 1, 1, 2], [0], [0]>} : vector<4x8x8xbf16>, vector<4x8x32xbf16>, vector<4x8x32xf32> -> vector<4x8x32xf32>
    %cst_40 = arith.constant dense<0.000000e+00> : vector<8x32xf32>
    %63 = vector.multi_reduction <add>, %62, %cst_40 [0] : vector<4x8x32xf32> to vector<8x32xf32>
    %64 = arith.addf %1, %63 : vector<8x32xf32>
    %c0_41 = arith.constant 0 : index
    %c0_42 = arith.constant 0 : index
    %65 = vector.load %arg11[%c0_41, %c0_42] : memref<1x32xf32, #tpu.memory_space<vmem>>, vector<1x32xf32>
    %66 = vector.broadcast %65 : vector<1x32xf32> to vector<8x32xf32>
    %67 = arith.addf %64, %66 : vector<8x32xf32>
    %c0_43 = arith.constant 0 : index
    %c0_44 = arith.constant 0 : index
    %68 = vector.load %arg12[%c0_43, %c0_44] : memref<1x32xf32, #tpu.memory_space<vmem>>, vector<1x32xf32>
    %c0_45 = arith.constant 0 : index
    %c0_46 = arith.constant 0 : index
    %69 = vector.load %arg13[%c0_45, %c0_46] : memref<1x32xf32, #tpu.memory_space<vmem>>, vector<1x32xf32>
    %cst_47 = arith.constant dense<0.000000e+00> : vector<8xf32>
    %70 = vector.multi_reduction <add>, %67, %cst_47 [1] : vector<8x32xf32> to vector<8xf32>
    %71 = vector.shape_cast %70 : vector<8xf32> to vector<8x1xf32>
    %cst_48 = arith.constant 3.200000e+01 : f32
    %72 = vector.broadcast %cst_48 : f32 to vector<8x1xf32>
    %73 = arith.divf %71, %72 : vector<8x1xf32>
    %74 = vector.broadcast %73 : vector<8x1xf32> to vector<8x32xf32>
    %75 = arith.subf %67, %74 : vector<8x32xf32>
    %76 = arith.mulf %75, %75 : vector<8x32xf32>
    %cst_49 = arith.constant dense<0.000000e+00> : vector<8xf32>
    %77 = vector.multi_reduction <add>, %76, %cst_49 [1] : vector<8x32xf32> to vector<8xf32>
    %78 = vector.shape_cast %77 : vector<8xf32> to vector<8x1xf32>
    %cst_50 = arith.constant 3.200000e+01 : f32
    %79 = vector.broadcast %cst_50 : f32 to vector<8x1xf32>
    %80 = arith.divf %78, %79 : vector<8x1xf32>
    %cst_51 = arith.constant 9.99999974E-6 : f32
    %81 = vector.broadcast %cst_51 : f32 to vector<8x1xf32>
    %82 = arith.addf %80, %81 : vector<8x1xf32>
    %83 = math.rsqrt %82 : vector<8x1xf32>
    %84 = vector.broadcast %83 : vector<8x1xf32> to vector<8x32xf32>
    %85 = arith.mulf %75, %84 : vector<8x32xf32>
    %86 = vector.broadcast %68 : vector<1x32xf32> to vector<8x32xf32>
    %87 = arith.mulf %85, %86 : vector<8x32xf32>
    %88 = vector.broadcast %69 : vector<1x32xf32> to vector<8x32xf32>
    %89 = arith.addf %87, %88 : vector<8x32xf32>
    %90 = arith.truncf %89 : vector<8x32xf32> to vector<8x32xbf16>
    %c0_52 = arith.constant 0 : index
    %c0_53 = arith.constant 0 : index
    %91 = vector.load %arg14[%c0_52, %c0_53] : memref<32x64xbf16, #tpu.memory_space<vmem>>, vector<32x64xbf16>
    %cst_54 = arith.constant dense<0.000000e+00> : vector<8x64xf32>
    %92 = tpu.matmul %90, %91, %cst_54 {dimension_numbers = #tpu.dot_dimension_numbers<[1], [0], [0], [1], [0, 0, 1, 1], [], []>} : vector<8x32xbf16>, vector<32x64xbf16>, vector<8x64xf32> -> vector<8x64xf32>
    %c0_55 = arith.constant 0 : index
    %c0_56 = arith.constant 0 : index
    %93 = vector.load %arg15[%c0_55, %c0_56] : memref<1x64xf32, #tpu.memory_space<vmem>>, vector<1x64xf32>
    %94 = vector.broadcast %93 : vector<1x64xf32> to vector<8x64xf32>
    %95 = arith.addf %92, %94 : vector<8x64xf32>
    %cst_57 = arith.constant 5.000000e-01 : f32
    %96 = vector.broadcast %cst_57 : f32 to vector<8x64xf32>
    %97 = arith.mulf %96, %95 : vector<8x64xf32>
    %cst_58 = arith.constant 1.41421354 : f32
    %98 = vector.broadcast %cst_58 : f32 to vector<8x64xf32>
    %99 = arith.divf %95, %98 : vector<8x64xf32>
    %100 = math.absf %99 : vector<8x64xf32>
    %cst_59 = arith.constant 0.327591091 : f32
    %101 = vector.broadcast %cst_59 : f32 to vector<8x64xf32>
    %102 = arith.mulf %101, %100 : vector<8x64xf32>
    %cst_60 = arith.constant 1.000000e+00 : f32
    %103 = vector.broadcast %cst_60 : f32 to vector<8x64xf32>
    %104 = arith.addf %103, %102 : vector<8x64xf32>
    %cst_61 = arith.constant 1.000000e+00 : f32
    %105 = vector.broadcast %cst_61 : f32 to vector<8x64xf32>
    %106 = arith.divf %105, %104 : vector<8x64xf32>
    %cst_62 = arith.constant 1.06140542 : f32
    %107 = vector.broadcast %cst_62 : f32 to vector<8x64xf32>
    %108 = arith.mulf %107, %106 : vector<8x64xf32>
    %cst_63 = arith.constant -1.45315206 : f32
    %109 = vector.broadcast %cst_63 : f32 to vector<8x64xf32>
    %110 = arith.addf %108, %109 : vector<8x64xf32>
    %111 = arith.mulf %110, %106 : vector<8x64xf32>
    %cst_64 = arith.constant 1.42141378 : f32
    %112 = vector.broadcast %cst_64 : f32 to vector<8x64xf32>
    %113 = arith.addf %111, %112 : vector<8x64xf32>
    %114 = arith.mulf %113, %106 : vector<8x64xf32>
    %cst_65 = arith.constant -0.284496725 : f32
    %115 = vector.broadcast %cst_65 : f32 to vector<8x64xf32>
    %116 = arith.addf %114, %115 : vector<8x64xf32>
    %117 = arith.mulf %116, %106 : vector<8x64xf32>
    %cst_66 = arith.constant 0.254829586 : f32
    %118 = vector.broadcast %cst_66 : f32 to vector<8x64xf32>
    %119 = arith.addf %117, %118 : vector<8x64xf32>
    %120 = arith.mulf %119, %106 : vector<8x64xf32>
    %cst_67 = arith.constant 0.000000e+00 : f32
    %121 = vector.broadcast %cst_67 : f32 to vector<8x64xf32>
    %122 = arith.subf %121, %100 : vector<8x64xf32>
    %123 = arith.mulf %122, %100 : vector<8x64xf32>
    %124 = math.exp %123 : vector<8x64xf32>
    %125 = arith.mulf %120, %124 : vector<8x64xf32>
    %cst_68 = arith.constant 1.000000e+00 : f32
    %126 = vector.broadcast %cst_68 : f32 to vector<8x64xf32>
    %127 = arith.subf %126, %125 : vector<8x64xf32>
    %cst_69 = arith.constant 0.000000e+00 : f32
    %128 = vector.broadcast %cst_69 : f32 to vector<8x64xf32>
    %129 = arith.cmpf oge, %99, %128 : vector<8x64xf32>
    %cst_70 = arith.constant 0.000000e+00 : f32
    %130 = vector.broadcast %cst_70 : f32 to vector<8x64xf32>
    %131 = arith.subf %130, %127 : vector<8x64xf32>
    %132 = arith.select %129, %127, %131 : vector<8x64xi1>, vector<8x64xf32>
    %cst_71 = arith.constant 1.000000e+00 : f32
    %133 = vector.broadcast %cst_71 : f32 to vector<8x64xf32>
    %134 = arith.addf %133, %132 : vector<8x64xf32>
    %135 = arith.mulf %97, %134 : vector<8x64xf32>
    %136 = arith.truncf %135 : vector<8x64xf32> to vector<8x64xbf16>
    %c0_72 = arith.constant 0 : index
    %c0_73 = arith.constant 0 : index
    %137 = vector.load %arg16[%c0_72, %c0_73] : memref<64x32xbf16, #tpu.memory_space<vmem>>, vector<64x32xbf16>
    %cst_74 = arith.constant dense<0.000000e+00> : vector<8x32xf32>
    %138 = tpu.matmul %136, %137, %cst_74 {dimension_numbers = #tpu.dot_dimension_numbers<[1], [0], [0], [1], [0, 0, 1, 1], [], []>} : vector<8x64xbf16>, vector<64x32xbf16>, vector<8x32xf32> -> vector<8x32xf32>
    %c0_75 = arith.constant 0 : index
    %c0_76 = arith.constant 0 : index
    %139 = vector.load %arg17[%c0_75, %c0_76] : memref<1x32xf32, #tpu.memory_space<vmem>>, vector<1x32xf32>
    %140 = vector.broadcast %139 : vector<1x32xf32> to vector<8x32xf32>
    %141 = arith.addf %138, %140 : vector<8x32xf32>
    %142 = arith.addf %67, %141 : vector<8x32xf32>
    %c0_77 = arith.constant 0 : index
    %c0_78 = arith.constant 0 : index
    %c0_79 = arith.constant 0 : index
    %143 = vector.load %arg18[%c0_77, %c0_78, %c0_79] : memref<1x8x32xf32, #tpu.memory_space<vmem>>, vector<1x8x32xf32>
    %144 = vector.shape_cast %143 : vector<1x8x32xf32> to vector<8x32xf32>
    %145 = vector.shape_cast %142 : vector<8x32xf32> to vector<1x8x32xf32>
    tpu.vector_store %arg18[%c0_77, %c0_78, %c0_79], %145 {strides = array<i32>} : memref<1x8x32xf32, #tpu.memory_space<vmem>>, vector<1x8x32xf32>,
    return
  }
  func.func @transform_0(%arg0: i32) -> (i32, i32, i32) {
    %c0_i32 = arith.constant 0 : i32
    %c0_i32_0 = arith.constant 0 : i32
    %c0_i32_1 = arith.constant 0 : i32
    return %arg0, %c0_i32, %c0_i32_0 : i32, i32, i32
  }
  func.func @transform_1(%arg0: i32) -> (i32, i32) {
    %c0_i32 = arith.constant 0 : i32
    %c0_i32_0 = arith.constant 0 : i32
    %c0_i32_1 = arith.constant 0 : i32
    return %c0_i32, %c0_i32_0 : i32, i32
  }
  func.func @transform_2(%arg0: i32) -> (i32, i32) {
    %c0_i32 = arith.constant 0 : i32
    %c0_i32_0 = arith.constant 0 : i32
    %c0_i32_1 = arith.constant 0 : i32
    return %c0_i32, %c0_i32_0 : i32, i32
  }
  func.func @transform_3(%arg0: i32) -> (i32, i32, i32) {
    %c0_i32 = arith.constant 0 : i32
    %c0_i32_0 = arith.constant 0 : i32
    %c0_i32_1 = arith.constant 0 : i32
    %c0_i32_2 = arith.constant 0 : i32
    return %c0_i32, %c0_i32_0, %c0_i32_1 : i32, i32, i32
  }
  func.func @transform_4(%arg0: i32) -> (i32, i32, i32) {
    %c0_i32 = arith.constant 0 : i32
    %c0_i32_0 = arith.constant 0 : i32
    %c0_i32_1 = arith.constant 0 : i32
    %c0_i32_2 = arith.constant 0 : i32
    return %c0_i32, %c0_i32_0, %c0_i32_1 : i32, i32, i32
  }
  func.func @transform_5(%arg0: i32) -> (i32, i32, i32) {
    %c0_i32 = arith.constant 0 : i32
    %c0_i32_0 = arith.constant 0 : i32
    %c0_i32_1 = arith.constant 0 : i32
    %c0_i32_2 = arith.constant 0 : i32
    return %c0_i32, %c0_i32_0, %c0_i32_1 : i32, i32, i32
  }
  func.func @transform_6(%arg0: i32) -> (i32, i32, i32) {
    %c0_i32 = arith.constant 0 : i32
    %c0_i32_0 = arith.constant 0 : i32
    %c0_i32_1 = arith.constant 0 : i32
    %c0_i32_2 = arith.constant 0 : i32
    return %c0_i32, %c0_i32_0, %c0_i32_1 : i32, i32, i32
  }
  func.func @transform_7(%arg0: i32) -> (i32, i32, i32) {
    %c0_i32 = arith.constant 0 : i32
    %c0_i32_0 = arith.constant 0 : i32
    %c0_i32_1 = arith.constant 0 : i32
    %c0_i32_2 = arith.constant 0 : i32
    return %c0_i32, %c0_i32_0, %c0_i32_1 : i32, i32, i32
  }
  func.func @transform_8(%arg0: i32) -> (i32, i32, i32) {
    %c0_i32 = arith.constant 0 : i32
    %c0_i32_0 = arith.constant 0 : i32
    %c0_i32_1 = arith.constant 0 : i32
    %c0_i32_2 = arith.constant 0 : i32
    return %c0_i32, %c0_i32_0, %c0_i32_1 : i32, i32, i32
  }
  func.func @transform_9(%arg0: i32) -> (i32, i32, i32) {
    %c0_i32 = arith.constant 0 : i32
    %c0_i32_0 = arith.constant 0 : i32
    %c0_i32_1 = arith.constant 0 : i32
    %c0_i32_2 = arith.constant 0 : i32
    return %c0_i32, %c0_i32_0, %c0_i32_1 : i32, i32, i32
  }
  func.func @transform_10(%arg0: i32) -> (i32, i32) {
    %c0_i32 = arith.constant 0 : i32
    %c0_i32_0 = arith.constant 0 : i32
    %c0_i32_1 = arith.constant 0 : i32
    return %c0_i32, %c0_i32_0 : i32, i32
  }
  func.func @transform_11(%arg0: i32) -> (i32, i32) {
    %c0_i32 = arith.constant 0 : i32
    %c0_i32_0 = arith.constant 0 : i32
    %c0_i32_1 = arith.constant 0 : i32
    return %c0_i32, %c0_i32_0 : i32, i32
  }
  func.func @transform_12(%arg0: i32) -> (i32, i32) {
    %c0_i32 = arith.constant 0 : i32
    %c0_i32_0 = arith.constant 0 : i32
    %c0_i32_1 = arith.constant 0 : i32
    return %c0_i32, %c0_i32_0 : i32, i32
  }
  func.func @transform_13(%arg0: i32) -> (i32, i32) {
    %c0_i32 = arith.constant 0 : i32
    %c0_i32_0 = arith.constant 0 : i32
    %c0_i32_1 = arith.constant 0 : i32
    return %c0_i32, %c0_i32_0 : i32, i32
  }
  func.func @transform_14(%arg0: i32) -> (i32, i32) {
    %c0_i32 = arith.constant 0 : i32
    %c0_i32_0 = arith.constant 0 : i32
    %c0_i32_1 = arith.constant 0 : i32
    return %c0_i32, %c0_i32_0 : i32, i32
  }
  func.func @transform_15(%arg0: i32) -> (i32, i32) {
    %c0_i32 = arith.constant 0 : i32
    %c0_i32_0 = arith.constant 0 : i32
    %c0_i32_1 = arith.constant 0 : i32
    return %c0_i32, %c0_i32_0 : i32, i32
  }
  func.func @transform_16(%arg0: i32) -> (i32, i32) {
    %c0_i32 = arith.constant 0 : i32
    %c0_i32_0 = arith.constant 0 : i32
    %c0_i32_1 = arith.constant 0 : i32
    return %c0_i32, %c0_i32_0 : i32, i32
  }
  func.func @transform_17(%arg0: i32) -> (i32, i32, i32) {
    %c0_i32 = arith.constant 0 : i32
    %c0_i32_0 = arith.constant 0 : i32
    %c0_i32_1 = arith.constant 0 : i32
    return %arg0, %c0_i32, %c0_i32_0 : i32, i32, i32
  }
}

</mosaic_0001>

<bundles_post_ra>
// kernel: attention_block.1
= control target key start
LH: loop header
LB: loop body
LE: loop exit
PB: predicated region body
PF: predicated region fallthrough
CT: control target
= control target key end

     0   :  { %s1868_s24 = smov 0   ;;  %s2121_s0 = inlined_call_operand.vmem [shape: f32[2,8,32], index: 0, kind: input, shape index: {}]   ;;  %s2122_s1 = inlined_call_operand.vmem [shape: f32[1,32], index: 1, kind: input, shape index: {}]   ;;  %s2123_s2 = inlined_call_operand.vmem [shape: f32[1,32], index: 2, kind: input, shape index: {}]   ;;  %s2124_s3 = inlined_call_operand.vmem [shape: bf16[4,32,8], index: 3, kind: input, shape index: {}]   ;;  %s2125_s4 = inlined_call_operand.vmem [shape: bf16[4,32,8], index: 4, kind: input, shape index: {}]   ;;  %s2126_s5 = inlined_call_operand.vmem [shape: bf16[4,32,8], index: 5, kind: input, shape index: {}]   ;;  %s2127_s6 = inlined_call_operand.vmem [shape: f32[4,1,8], index: 6, kind: input, shape index: {}]   ;;  %s2128_s7 = inlined_call_operand.vmem [shape: f32[4,1,8], index: 7, kind: input, shape index: {}]   ;;  %s2129_s8 = inlined_call_operand.vmem [shape: f32[4,1,8], index: 8, kind: input, shape index: {}]   ;;  %s2130_s9 = inlined_call_operand.vmem [shape: bf16[4,8,32], index: 9, kind: input, shape index: {}]   ;;  %s2131_s10 = inlined_call_operand.vmem [shape: f32[1,32], index: 10, kind: input, shape index: {}]   ;;  %s2132_s11 = inlined_call_operand.vmem [shape: f32[1,32], index: 11, kind: input, shape index: {}]   ;;  %s2133_s12 = inlined_call_operand.vmem [shape: f32[1,32], index: 12, kind: input, shape index: {}]   ;;  %s2134_s13 = inlined_call_operand.vmem [shape: bf16[32,64], index: 13, kind: input, shape index: {}]   ;;  %s2135_s14 = inlined_call_operand.vmem [shape: f32[1,64], index: 14, kind: input, shape index: {}]   ;;  %s2136_s15 = inlined_call_operand.vmem [shape: bf16[64,32], index: 15, kind: input, shape index: {}]   ;;  %s2137_s16 = inlined_call_operand.vmem [shape: f32[1,32], index: 16, kind: input, shape index: {}]   ;;  %s2138_s17 = inlined_call_operand.vmem [shape: f32[2,8,32], index: 17, kind: output, shape index: {}]  }
   0x1   :  { %2139 = sst [smem:[#allocation2_spill]] %s2121_s0 }
   0x2   :  { %2140 = sst [smem:[#allocation3_spill]] %s2122_s1 }
   0x3 LB: > { %s1526_s25 = sadd.s32 4294967295, %s1774_s24   ;;  %p1530_p0 = scmp.ge.s32.totalorder %s1774_s24, 1  ;;  %s1774_s24 = sphi %s1868_s24, %s27_s24  }
   0x4   : > { %p486_p1 = scmp.lt.s32.totalorder %s1774_s24, 3 }
   0x6   : > { %p487_p2 = pnand %p1530_p0, %p486_p1 }
   0x7   : > { %p536_p3 = scmp.lt.s32.totalorder (!%p487_p2), %s1526_s25, 1  ;;  %s2141_s29 = sld [smem:[#allocation2_spill]] (!%p487_p2) }
   0x8   : > { %490 = sbr.rel (%p487_p2) target bundleno = 1705 (0x6a9), region = 88 }
   0xd   : > { %s2144_s25 = smov (!%p536_p3, %s1526_s25), 1  ;;  %vm548_vm0 = vcmask 261120   ;;  %v1776_v2 = vmov 32.0   ;;  %v1682_v14 = vld [vmem:[%s2124_s3 + $0x8] sm:$0xff]  ;;  %v1684_v15 = vld [vmem:[%s2124_s3 + $0x18] sm:$0xff]  ;;  %v1681_v18 = vld [vmem:[%s2124_s3] sm:$0xff] }
   0xe   : > { %s1531_s26 = sshll.u32 %s2144_s25, 3  ;;  %1740 = vrcp.f32 %v1776_v2  ;;  %v1686_v16 = vld [vmem:[%s2124_s3 + $0x28] sm:$0xff]  ;;  %v1688_v17 = vld [vmem:[%s2124_s3 + $0x38] sm:$0xff]  ;;  %640 = vmatpush.bf16.msra.mxu0 %v1682_v14  ;;  %665 = vmatpush.bf16.msra.mxu1 %v1684_v15  ;;  %v1683_v19 = vld [vmem:[%s2124_s3 + $0x10] sm:$0xff]  ;;  %vm1002_vm5 = vcmask 64512   ;;  %vm1130_vm6 = vcmask 1043456  }
   0xf   : > { %s539_s0 = scalar_lea.vmem %s2141_s29, %s1531_s26  ;;  %690 = vmatpush.bf16.msra.mxu2 %v1686_v16  ;;  %715 = vmatpush.bf16.msra.mxu3 %v1688_v17  ;;  %v1685_v20 = vld [vmem:[%s2124_s3 + $0x20] sm:$0xff]  ;;  %v1687_v21 = vld [vmem:[%s2124_s3 + $0x30] sm:$0xff]  ;;  %v1690_v23 = vld [vmem:[%s2125_s4 + $0x8] sm:$0xff]  ;;  %s2142_s29 = sld [smem:[#allocation3_spill]] }
  0x10   : > { %v1884_v0 = vld [vmem:[%s539_s0] sm:$0xff]  ;;  %v1692_v24 = vld [vmem:[%s2125_s4 + $0x18] sm:$0xff]  ;;  %v1694_v25 = vld [vmem:[%s2125_s4 + $0x28] sm:$0xff]  ;;  %s543_s18 = scalar_lea.vmem %s2138_s17, %s1531_s26 }
  0x11   : > { %v549_v1 = vsel %vm548_vm0, %v1884_v0, 0.0  ;;  %v1696_v27 = vld [vmem:[%s2125_s4 + $0x38] sm:$0xff]  ;;  %v1689_v28 = vld [vmem:[%s2125_s4] sm:$0xff]  ;;  %v1691_v29 = vld [vmem:[%s2125_s4 + $0x10] sm:$0xff] }
  0x12   : > { %550 = vadd.xlane.f32.xlu0 %v549_v1  ;;  %641 = vmatpush.bf16.msra.mxu0 %v1681_v18  ;;  %v1693_v31 = vld [vmem:[%s2125_s4 + $0x20] sm:$0xff]  ;;  %v1695_v32 = vld [vmem:[%s2125_s4 + $0x30] sm:$0xff]  ;;  %v1698_v46 = vld [vmem:[%s2126_s5 + $0x8] sm:$0xff] }
  0x13   : > { %666 = vmatpush.bf16.msra.mxu1 %v1683_v19  ;;  %691 = vmatpush.bf16.msra.mxu2 %v1685_v20  ;;  %v1722_v41 = vld [vmem:[%s2123_s2] ss:$0 sm:$0xff]  ;;  %v1700_v47 = vld [vmem:[%s2126_s5 + $0x18] sm:$0xff]  ;;  %v1702_v48 = vld [vmem:[%s2126_s5 + $0x28] sm:$0xff] }
  0x14   : > { %v1741_v3 = vpop.eup %1740  ;;  %716 = vmatpush.bf16.msra.mxu3 %v1687_v21  ;;  %v1704_v49 = vld [vmem:[%s2126_s5 + $0x38] sm:$0xff]  ;;  %v1697_v50 = vld [vmem:[%s2126_s5] sm:$0xff]  ;;  %v1699_v51 = vld [vmem:[%s2126_s5 + $0x10] sm:$0xff] }
  0x15   : > { %v553_v4 = vmul.f32 32.0, %v1741_v3  ;;  %vm557_vm1 = vweird.f32 %v1741_v3  ;;  %v1721_v39 = vld [vmem:[%s2142_s29] ss:$0 sm:$0xff]  ;;  %v1703_v53 = vld [vmem:[%s2126_s5 + $0x30] sm:$0xff]  ;;  %v1728_v61 = vld [vmem:[%s2128_s7 + $0x1] ss:$0 sm:$0xff] }
  0x16   : > { %772 = vmatpush.bf16.msrb.mxu0 %v1690_v23  ;;  %v1701_v52 = vld [vmem:[%s2126_s5 + $0x20] sm:$0xff] }
  0x17   : > { %v554_v5 = vsub.f32 1.0, %v553_v4  ;;  %797 = vmatpush.bf16.msrb.mxu1 %v1692_v24  ;;  %822 = vmatpush.bf16.msrb.mxu2 %v1694_v25  ;;  %v1727_v60 = vld [vmem:[%s2128_s7] ss:$0 sm:$0xff]  ;;  %v1724_v2 = vld [vmem:[%s2127_s6 + $0x1] ss:$0 sm:$0xff] }
  0x18   : > { %847 = vmatpush.bf16.msrb.mxu3 %v1696_v27  ;;  %v1723_v1 = vld [vmem:[%s2127_s6] ss:$0 sm:$0xff]  ;;  %v1725_v16 = vld [vmem:[%s2127_s6 + $0x2] ss:$0 sm:$0xff]  ;;  %v1726_v17 = vld [vmem:[%s2127_s6 + $0x3] ss:$0 sm:$0xff] }
  0x19   : > { %v555_v6 = vmul.f32 %v1741_v3, %v554_v5 }
  0x1a   : > { %773 = vmatpush.bf16.msrb.mxu0 %v1689_v28 }
  0x1b   : > { %v556_v7 = vadd.f32 %v1741_v3, %v555_v6  ;;  %798 = vmatpush.bf16.msrb.mxu1 %v1691_v29  ;;  %823 = vmatpush.bf16.msrb.mxu2 %v1693_v31 }
  0x1c   : > { %848 = vmatpush.bf16.msrb.mxu3 %v1695_v32 }
  0x1d   : > { %v1888_v8 = vsel %vm557_vm1, %v1741_v3, %v556_v7  ;;  %vm1454_vm1 = vcmask 523264  }
  0x85   : > { %v551_v9 = vpop.xlane.xlu0 %550 }
  0x86   : > { %v559_v10 = vmul.f32 %v1888_v8, %v551_v9 }
  0x88   : > { %v560_v11 = vsub.f32 %v1884_v0, %v559_v10 }
  0x8a   : > { %v561_v12 = vmul.f32 %v560_v11, %v560_v11 }
  0x8c   : > { %v562_v13 = vsel %vm548_vm0, %v561_v12, 0.0  ;;  %v1729_v12 = vld [vmem:[%s2128_s7 + $0x2] ss:$0 sm:$0xff] }
  0x8d   : > { %563 = vadd.xlane.f32.xlu0 %v562_v13  ;;  %v1730_v13 = vld [vmem:[%s2128_s7 + $0x3] ss:$0 sm:$0xff] }
 0x100   : > { %v564_v22 = vpop.xlane.xlu0 %563 }
 0x101   : > { %v565_v26 = vmul.f32 %v564_v22, %v1888_v8 }
 0x103   : > { %v566_v30 = vadd.f32 1e-05, %v565_v26 }
 0x105   : > { %1742 = vrsqrt.f32 %v566_v30  ;;  %vm573_vm3 = vweird.f32 %v566_v30 }
 0x10b   : > { %v1743_v33 = vpop.eup %1742 }
 0x10c   : > { %v568_v34 = vmul.f32 %v1743_v33, %v566_v30  ;;  %vm574_vm2 = vweird.f32 %v1743_v33 }
 0x10d   : > { %vm575_vm4 = vmor %vm573_vm3, %vm574_vm2 }
 0x10e   : > { %v569_v35 = vmul.f32 %v1743_v33, %v568_v34  ;;  %v1731_v34 = vld [vmem:[%s2129_s8] ss:$0 sm:$0xff] }
 0x110   : > { %v570_v36 = vmul.f32 0.5, %v569_v35  ;;  %v1732_v35 = vld [vmem:[%s2129_s8 + $0x1] ss:$0 sm:$0xff] }
 0x112   : > { %v571_v37 = vsub.f32 1.5, %v570_v36 }
 0x114   : > { %v572_v38 = vmul.f32 %v1743_v33, %v571_v37 }
 0x116   : > { %v576_v40 = vsel %vm575_vm4, %v1743_v33, %v572_v38 }
 0x117   : > { %v577_v42 = vmul.f32 %v576_v40, %v560_v11 }
 0x119   : > { %v581_v43 = vmul.f32 %v1721_v39, %v577_v42 }
 0x11b   : > { %v585_v44 = vadd.f32 %v1722_v41, %v581_v43 }
 0x11d   : > { %v586_v45 = vpack.c.bf16 %v585_v44, %v585_v44 }
 0x11f   : > { %1541 = vmatmul.msk.bf16.vlgmr.msra.gmra.mxu0 %vm548_vm0, %v586_v45  ;;  %1550 = vmatmul.msk.bf16.vlgmr.msra.gmra.mxu1 %vm548_vm0, %v586_v45 }
 0x120   : > { %1559 = vmatmul.msk.bf16.vlgmr.msra.gmra.mxu2 %vm548_vm0, %v586_v45  ;;  %1568 = vmatmul.msk.bf16.vlgmr.msra.gmra.mxu3 %vm548_vm0, %v586_v45 }
 0x121   : > { %904 = vmatpush.bf16.msra.mxu0 %v1698_v46  ;;  %929 = vmatpush.bf16.msra.mxu1 %v1700_v47 }
 0x122   : > { %954 = vmatpush.bf16.msra.mxu2 %v1702_v48  ;;  %979 = vmatpush.bf16.msra.mxu3 %v1704_v49  ;;  %v1733_v48 = vld [vmem:[%s2129_s8 + $0x2] ss:$0 sm:$0xff]  ;;  %v1734_v49 = vld [vmem:[%s2129_s8 + $0x3] ss:$0 sm:$0xff] }
 0x125   : > { %905 = vmatpush.bf16.msra.mxu0 %v1697_v50  ;;  %930 = vmatpush.bf16.msra.mxu1 %v1699_v51 }
 0x126   : > { %955 = vmatpush.bf16.msra.mxu2 %v1701_v52  ;;  %980 = vmatpush.bf16.msra.mxu3 %v1703_v53 }
 0x12f   : > { %1577 = vmatmul.msk.bf16.vlgmr.msrb.gmra.mxu0 %vm548_vm0, %v586_v45  ;;  %1586 = vmatmul.msk.bf16.vlgmr.msrb.gmra.mxu1 %vm548_vm0, %v586_v45 }
 0x130   : > { %1595 = vmatmul.msk.bf16.vlgmr.msrb.gmra.mxu2 %vm548_vm0, %v586_v45  ;;  %1604 = vmatmul.msk.bf16.vlgmr.msrb.gmra.mxu3 %vm548_vm0, %v586_v45 }
 0x13f   : > { %1613 = vmatmul.msk.bf16.vlgmr.msra.gmra.mxu0 %vm548_vm0, %v586_v45  ;;  %1622 = vmatmul.msk.bf16.vlgmr.msra.gmra.mxu1 %vm548_vm0, %v586_v45 }
 0x140   : > { %1631 = vmatmul.msk.bf16.vlgmr.msra.gmra.mxu2 %vm548_vm0, %v586_v45  ;;  %1640 = vmatmul.msk.bf16.vlgmr.msra.gmra.mxu3 %vm548_vm0, %v586_v45 }
 0x19c   : > { %v643_v54 = vpop.f32.mrf.mxu0  ;;  %v668_v55 = vpop.f32.mrf.mxu1 }
 0x19d   : > { %v644_v10 = vadd.f32 %v1723_v1, %v643_v54  ;;  %v669_v11 = vadd.f32 %v1724_v2, %v668_v55 }
 0x19f   : > { %v986_v20 = vmul.f32 0.35355338, %v644_v10  ;;  %v987_v21 = vmul.f32 0.35355338, %v669_v11 }
 0x1a1   : > { %v990_v30 = vpack.c.bf16 %v986_v20, %v986_v20  ;;  %v991_v31 = vpack.c.bf16 %v987_v21, %v987_v21 }
 0x1a3   : > { %v693_v56 = vpop.f32.mrf.mxu2  ;;  %v718_v57 = vpop.f32.mrf.mxu3 }
 0x1a4   : > { %v645_v58 = vpop.f32.mrf.mxu0  ;;  %v670_v59 = vpop.f32.mrf.mxu1  ;;  %v694_v26 = vadd.f32 %v1725_v16, %v693_v56  ;;  %v719_v27 = vadd.f32 %v1726_v17, %v718_v57 }
 0x1a6   : > { %v988_v36 = vmul.f32 0.35355338, %v694_v26  ;;  %v989_v37 = vmul.f32 0.35355338, %v719_v27 }
 0x1a8   : > { %v992_v44 = vpack.c.bf16 %v988_v36, %v988_v36  ;;  %v993_v45 = vpack.c.bf16 %v989_v37, %v989_v37 }
 0x1ab   : > { %v695_v62 = vpop.f32.mrf.mxu2  ;;  %v720_v63 = vpop.f32.mrf.mxu3 }
 0x1ac   : > { %v775_v3 = vpop.f32.mrf.mxu0  ;;  %v800_v4 = vpop.f32.mrf.mxu1 }
 0x1ad   : > { %v776_v5 = vadd.f32 %v1727_v60, %v775_v3  ;;  %v801_v6 = vadd.f32 %v1728_v61, %v800_v4 }
 0x1af   : > { %v994_v7 = vpack.c.bf16 %v776_v5, %v776_v5  ;;  %v995_v9 = vpack.c.bf16 %v801_v6, %v801_v6 }
 0x1b1   : > { %v1007_v14 = vsel %vm1002_vm5, %v994_v7, 0  ;;  %v1026_v15 = vsel %vm1002_vm5, %v995_v9, 0 }
 0x1b2   : > { %1016 = vmatpush.bf16.xpose.msrb.mxu0 %v1007_v14  ;;  %1035 = vmatpush.bf16.xpose.msrb.mxu1 %v1026_v15 }
 0x1b3   : > { %v825_v18 = vpop.f32.mrf.mxu2  ;;  %v850_v19 = vpop.f32.mrf.mxu3 }
 0x1b4   : > { %v826_v22 = vadd.f32 %v1729_v12, %v825_v18  ;;  %v851_v23 = vadd.f32 %v1730_v13, %v850_v19  ;;  %v777_v24 = vpop.f32.mrf.mxu0  ;;  %v802_v25 = vpop.f32.mrf.mxu1 }
 0x1b6   : > { %v996_v28 = vpack.c.bf16 %v826_v22, %v826_v22  ;;  %v997_v29 = vpack.c.bf16 %v851_v23, %v851_v23 }
 0x1b8   : > { %v1045_v32 = vsel %vm1002_vm5, %v996_v28, 0  ;;  %v1064_v33 = vsel %vm1002_vm5, %v997_v29, 0 }
 0x1b9   : > { %1054 = vmatpush.bf16.xpose.msrb.mxu2 %v1045_v32  ;;  %1073 = vmatpush.bf16.xpose.msrb.mxu3 %v1064_v33 }
 0x1ba   : > { %1641 = vmatmul.msk.bf16.vlgmr.msrb.gmra.mxu0 %vm1002_vm5, %v990_v30  ;;  %1642 = vmatmul.msk.bf16.vlgmr.msrb.gmra.mxu1 %vm1002_vm5, %v991_v31 }
 0x1bb   : > { %v827_v38 = vpop.f32.mrf.mxu2  ;;  %v852_v39 = vpop.f32.mrf.mxu3 }
 0x1bc   : > { %v907_v40 = vpop.f32.mrf.mxu0  ;;  %v932_v41 = vpop.f32.mrf.mxu1 }
 0x1bd   : > { %v908_v42 = vadd.f32 %v1731_v34, %v907_v40  ;;  %v933_v43 = vadd.f32 %v1732_v35, %v932_v41 }
 0x1bf   : > { %v998_v46 = vpack.c.bf16 %v908_v42, %v908_v42  ;;  %v999_v47 = vpack.c.bf16 %v933_v43, %v933_v43 }
 0x1c0   : > { %1643 = vmatmul.msk.bf16.vlgmr.msrb.gmra.mxu2 %vm1002_vm5, %v992_v44  ;;  %1644 = vmatmul.msk.bf16.vlgmr.msrb.gmra.mxu3 %vm1002_vm5, %v993_v45 }
 0x1c1   : > { %v1132_v50 = vsel %vm1130_vm6, %v998_v46, 0  ;;  %v1151_v51 = vsel %vm1130_vm6, %v999_v47, 0 }
 0x1c2   : > { %1141 = vmatpush.bf16.msra.mxu0 %v1132_v50  ;;  %1160 = vmatpush.bf16.msra.mxu1 %v1151_v51  ;;  %v1208_v50 = vld [vmem:[%s2130_s9] sm:$0xf] }
 0x1c3   : > { %v957_v52 = vpop.f32.mrf.mxu2  ;;  %v982_v53 = vpop.f32.mrf.mxu3  ;;  %v1216_v51 = vsel %vm1130_vm6, %v1208_v50, 0 }
 0x1c4   : > { %v958_v54 = vadd.f32 %v1733_v48, %v957_v52  ;;  %v983_v55 = vadd.f32 %v1734_v49, %v982_v53  ;;  %v909_v56 = vpop.f32.mrf.mxu0  ;;  %v934_v57 = vpop.f32.mrf.mxu1  ;;  %v1210_v52 = vld [vmem:[%s2130_s9 + $0x8] sm:$0xf] }
 0x1c5   : > { %v1254_v53 = vsel %vm1130_vm6, %v1210_v52, 0  ;;  %v1211_v56 = vld [vmem:[%s2130_s9 + $0xc] sm:$0xf] }
 0x1c6   : > { %v1000_v58 = vpack.c.bf16 %v958_v54, %v958_v54  ;;  %v1001_v59 = vpack.c.bf16 %v983_v55, %v983_v55  ;;  %1225 = vmatpush.bf16.msrb.mxu0 %v1216_v51  ;;  %v1209_v54 = vld [vmem:[%s2130_s9 + $0x4] sm:$0xf]  ;;  %v1273_v57 = vsel %vm1130_vm6, %v1211_v56, 0 }
 0x1c7   : > { %v1235_v55 = vsel %vm1130_vm6, %v1209_v54, 0  ;;  %v1738_v54 = vld [vmem:[%s2135_s14] ss:$0 sm:$0xff] }
 0x1c8   : > { %v1170_v60 = vsel %vm1130_vm6, %v1000_v58, 0  ;;  %v1189_v61 = vsel %vm1130_vm6, %v1001_v59, 0  ;;  %1244 = vmatpush.bf16.msrb.mxu1 %v1235_v55 }
 0x1c9   : > { %1179 = vmatpush.bf16.msra.mxu2 %v1170_v60  ;;  %1198 = vmatpush.bf16.msra.mxu3 %v1189_v61 }
 0x1cb   : > { %v959_v62 = vpop.f32.mrf.mxu2  ;;  %v984_v63 = vpop.f32.mrf.mxu3 }
 0x1cd   : > { %1263 = vmatpush.bf16.msrb.mxu2 %v1254_v53  ;;  %1282 = vmatpush.bf16.msrb.mxu3 %v1273_v57 }
 0x237   : > { %v1018_v1 = vpop.f32.mrf.mxu0  ;;  %v1037_v2 = vpop.f32.mrf.mxu1 }
 0x238   : > { %v1079_v3 = vsel %vm1002_vm5, %v1018_v1, -inf  ;;  %v1082_v6 = vsel %vm1002_vm5, %v1037_v2, -inf }
 0x239   : > { %1080 = vmax.xlane.f32.xlu2 %v1079_v3 }
 0x23f   : > { %v1020_v4 = vpop.f32.mrf.mxu0  ;;  %v1039_v5 = vpop.f32.mrf.mxu1 }
 0x241   : > { %1083 = vmax.xlane.f32.xlu2 %v1082_v6 }
 0x243   : > { %v1056_v7 = vpop.f32.mrf.mxu2  ;;  %v1075_v9 = vpop.f32.mrf.mxu3 }
 0x244   : > { %v1085_v10 = vsel %vm1002_vm5, %v1056_v7, -inf  ;;  %v1088_v13 = vsel %vm1002_vm5, %v1075_v9, -inf }
 0x245   : > { %1086 = vmax.xlane.f32.xlu1 %v1085_v10 }
 0x24b   : > { %v1058_v11 = vpop.f32.mrf.mxu2  ;;  %v1077_v12 = vpop.f32.mrf.mxu3 }
 0x24d   : > { %1089 = vmax.xlane.f32.xlu1 %v1088_v13 }
 0x2ac   : > { %v1081_v14 = vpop.xlane.xlu2 %1080 }
 0x2ad   : > { %v1091_v15 = vsub.f32 %v1018_v1, %v1081_v14 }
 0x2af   : > { %v1095_v16 = vmul.f32 1.442695, %v1091_v15 }
 0x2b1   : > { %1744 = vpow2.f32 %v1095_v16 }
 0x2b4   : > { %v1084_v18 = vpop.xlane.xlu2 %1083 }
 0x2b5   : > { %v1092_v22 = vsub.f32 %v1037_v2, %v1084_v18 }
 0x2b7   : > { %v1745_v17 = vpop.eup %1744  ;;  %v1097_v24 = vmul.f32 1.442695, %v1092_v22  ;;  %v1735_v22 = vld [vmem:[%s2131_s10] ss:$0 sm:$0xff] }
 0x2b8   : > { %v1087_v19 = vpop.xlane.xlu1 %1086  ;;  %v1103_v20 = vsel %vm1002_vm5, %v1745_v17, 0.0 }
 0x2b9   : > { %v1093_v21 = vsub.f32 %v1056_v7, %v1087_v19  ;;  %1104 = vadd.xlane.f32.xlu2 %v1103_v20 }
 0x2bb   : > { %v1099_v23 = vmul.f32 1.442695, %v1093_v21 }
 0x2bd   : > { %1746 = vpow2.f32 %v1099_v23 }
 0x2be   : > { %1748 = vpow2.f32 %v1097_v24 }
 0x2c0   : > { %v1090_v25 = vpop.xlane.xlu1 %1089 }
 0x2c1   : > { %v1094_v26 = vsub.f32 %v1075_v9, %v1090_v25 }
 0x2c3   : > { %v1747_v27 = vpop.eup %1746  ;;  %v1101_v28 = vmul.f32 1.442695, %v1094_v26 }
 0x2c4   : > { %v1109_v29 = vsel %vm1002_vm5, %v1747_v27, 0.0  ;;  %v1749_v30 = vpop.eup %1748 }
 0x2c5   : > { %1750 = vpow2.f32 %v1101_v28  ;;  %1110 = vadd.xlane.f32.xlu0 %v1109_v29  ;;  %v1106_v33 = vsel %vm1002_vm5, %v1749_v30, 0.0 }
 0x2cb   : > { %v1751_v31 = vpop.eup %1750 }
 0x2cc   : > { %v1112_v32 = vsel %vm1002_vm5, %v1751_v31, 0.0 }
 0x2cd   : > { %1113 = vadd.xlane.f32.xlu1 %v1112_v32  ;;  %1107 = vadd.xlane.f32.xlu0 %v1106_v33  ;;  %v1705_v32 = vld [vmem:[%s2134_s13] sm:$0xff] }
 0x32c   : > { %v1105_v34 = vpop.xlane.xlu2 %1104 }
 0x32d   : > { %1752 = vrcp.f32 %v1105_v34 }
 0x333   : > { %v1753_v35 = vpop.eup %1752 }
 0x334   : > { %v1119_v36 = vmul.f32 %v1753_v35, %v1745_v17 }
 0x336   : > { %v1123_v37 = vpack.c.bf16 %v1119_v36, %v1119_v36 }
 0x338   : > { %v1111_v38 = vpop.xlane.xlu0 %1110  ;;  %1645 = vmatmul.msk.bf16.vlgmr.msra.gmra.mxu0 %vm1002_vm5, %v1123_v37 }
 0x339   : > { %1754 = vrcp.f32 %v1111_v38 }
 0x33f   : > { %v1755_v39 = vpop.eup %1754 }
 0x340   : > { %v1121_v40 = vmul.f32 %v1755_v39, %v1747_v27  ;;  %v1114_v41 = vpop.xlane.xlu1 %1113  ;;  %v1108_v42 = vpop.xlane.xlu0 %1107 }
 0x341   : > { %1756 = vrcp.f32 %v1114_v41 }
 0x342   : > { %v1125_v43 = vpack.c.bf16 %v1121_v40, %v1121_v40  ;;  %1758 = vrcp.f32 %v1108_v42  ;;  %v1736_v42 = vld [vmem:[%s2132_s11] ss:$0 sm:$0xff] }
 0x344   : > { %1647 = vmatmul.msk.bf16.vlgmr.msra.gmra.mxu2 %vm1002_vm5, %v1125_v43 }
 0x347   : > { %v1757_v44 = vpop.eup %1756 }
 0x348   : > { %v1759_v45 = vpop.eup %1758  ;;  %v1122_v46 = vmul.f32 %v1757_v44, %v1751_v31 }
 0x349   : > { %v1120_v47 = vmul.f32 %v1759_v45, %v1749_v30 }
 0x34a   : > { %v1126_v48 = vpack.c.bf16 %v1122_v46, %v1122_v46 }
 0x34b   : > { %v1124_v49 = vpack.c.bf16 %v1120_v47, %v1120_v47 }
 0x34c   : > { %1648 = vmatmul.msk.bf16.vlgmr.msra.gmra.mxu3 %vm1002_vm5, %v1126_v48  ;;  %v1777_v48 = vmov 1.4142135  }
 0x34d   : > { %1646 = vmatmul.msk.bf16.vlgmr.msra.gmra.mxu1 %vm1002_vm5, %v1124_v49 }
 0x3b5   : > { %v1143_v58 = vpop.f32.mrf.mxu0 }
 0x3b6   : > { %v1204_v59 = vpack.c.bf16 %v1143_v58, %v1143_v58 }
 0x3b8   : > { %1649 = vmatmul.msk.bf16.vlgmr.msrb.gmra.mxu0 %vm1002_vm5, %v1204_v59 }
 0x3bd   : > { %v1145_v60 = vpop.f32.mrf.mxu0 }
 0x3c7   : > { %v1181_v61 = vpop.f32.mrf.mxu2 }
 0x3c8   : > { %v1206_v62 = vpack.c.bf16 %v1181_v61, %v1181_v61 }
 0x3ca   : > { %v1162_v63 = vpop.f32.mrf.mxu1  ;;  %1651 = vmatmul.msk.bf16.vlgmr.msrb.gmra.mxu2 %vm1002_vm5, %v1206_v62 }
 0x3cb   : > { %v1205_v1 = vpack.c.bf16 %v1162_v63, %v1162_v63  ;;  %v1710_v63 = vld [vmem:[%s2136_s15 + $0x18] sm:$0xff] }
 0x3cc   : > { %1462 = vmatpush.bf16.msra.mxu1 %v1710_v63 }
 0x3cd   : > { %1650 = vmatmul.msk.bf16.vlgmr.msrb.gmra.mxu1 %vm1002_vm5, %v1205_v1  ;;  %v1709_v1 = vld [vmem:[%s2136_s15 + $0x10] sm:$0xff] }
 0x3cf   : > { %v1183_v2 = vpop.f32.mrf.mxu2  ;;  %v1200_v3 = vpop.f32.mrf.mxu3 }
 0x3d0   : > { %v1207_v4 = vpack.c.bf16 %v1200_v3, %v1200_v3  ;;  %1463 = vmatpush.bf16.msra.mxu1 %v1709_v1 }
 0x3d2   : > { %v1164_v5 = vpop.f32.mrf.mxu1  ;;  %1652 = vmatmul.msk.bf16.vlgmr.msrb.gmra.mxu3 %vm1002_vm5, %v1207_v4  ;;  %v1708_v4 = vld [vmem:[%s2136_s15 + $0x8] sm:$0xff] }
 0x3d4   : > { %1464 = vmatpush.bf16.msra.mxu1 %v1708_v4 }
 0x3d7   : > { %v1202_v6 = vpop.f32.mrf.mxu3 }
 0x435   : > { %v1227_v7 = vpop.f32.mrf.mxu0 }
 0x436   : > { %v1288_v13 = vsel %vm548_vm0, %v1227_v7, 0.0 }
 0x43d   : > { %v1229_v9 = vpop.f32.mrf.mxu0 }
 0x44a   : > { %v1246_v10 = vpop.f32.mrf.mxu1 }
 0x44b   : > { %v1289_v12 = vsel %vm548_vm0, %v1246_v10, 0.0  ;;  %v1707_v10 = vld [vmem:[%s2136_s15] sm:$0xff] }
 0x44c   : > { %v1290_v16 = vadd.f32 %v1289_v12, %v1288_v13  ;;  %1465 = vmatpush.bf16.msra.mxu1 %v1707_v10 }
 0x44d   : > { %v1265_v11 = vpop.f32.mrf.mxu2 }
 0x44e   : > { %v1291_v14 = vsel %vm548_vm0, %v1265_v11, 0.0 }
 0x44f   : > { %v1292_v17 = vadd.f32 %v1291_v14, %v1290_v16 }
 0x452   : > { %v1248_v15 = vpop.f32.mrf.mxu1 }
 0x455   : > { %v1267_v18 = vpop.f32.mrf.mxu2  ;;  %v1284_v19 = vpop.f32.mrf.mxu3 }
 0x456   : > { %v1293_v20 = vsel %vm548_vm0, %v1284_v19, 0.0 }
 0x457   : > { %v1294_v21 = vadd.f32 %v1293_v20, %v1292_v17 }
 0x459   : > { %v1295_v23 = vadd.f32 %v1294_v21, %v1884_v0  ;;  %v1706_v0 = vld [vmem:[%s2134_s13 + $0x8] sm:$0xff] }
 0x45a   : > { %1363 = vmatpush.bf16.msra.mxu0 %v1706_v0 }
 0x45b   : > { %v2072_v24 = vadd.f32 %v1735_v22, %v1295_v23 }
 0x45d   : > { %v1286_v25 = vpop.f32.mrf.mxu3  ;;  %v1303_v26 = vsel %vm548_vm0, %v2072_v24, 0.0 }
 0x45e   : > { %1304 = vadd.xlane.f32.xlu1 %v1303_v26  ;;  %1364 = vmatpush.bf16.msra.mxu0 %v1705_v32 }
 0x4d1   : > { %v1305_v27 = vpop.xlane.xlu1 %1304 }
 0x4d2   : > { %v1306_v28 = vmul.f32 %v1305_v27, %v1888_v8 }
 0x4d4   : > { %v1307_v29 = vsub.f32 %v2072_v24, %v1306_v28 }
 0x4d6   : > { %v1308_v30 = vmul.f32 %v1307_v29, %v1307_v29 }
 0x4d8   : > { %v1309_v31 = vsel %vm548_vm0, %v1308_v30, 0.0 }
 0x4d9   : > { %1310 = vadd.xlane.f32.xlu2 %v1309_v31 }
 0x54c   : > { %v1311_v33 = vpop.xlane.xlu2 %1310 }
 0x54d   : > { %v1312_v34 = vmul.f32 %v1311_v33, %v1888_v8  ;;  %v1737_v8 = vld [vmem:[%s2133_s12] ss:$0 sm:$0xff] }
 0x54f   : > { %v1313_v35 = vadd.f32 1e-05, %v1312_v34 }
 0x551   : > { %1760 = vrsqrt.f32 %v1313_v35  ;;  %vm1320_vm8 = vweird.f32 %v1313_v35 }
 0x552   : > { %1762 = vrcp.f32 %v1777_v48 }
 0x557   : > { %v1761_v36 = vpop.eup %1760 }
 0x558   : > { %v1315_v37 = vmul.f32 %v1761_v36, %v1313_v35  ;;  %vm1321_vm7 = vweird.f32 %v1761_v36  ;;  %v1763_v49 = vpop.eup %1762 }
 0x559   : > { %vm1322_vm9 = vmor %vm1320_vm8, %vm1321_vm7  ;;  %v1372_v50 = vmul.f32 1.4142135, %v1763_v49  ;;  %vm1376_vm10 = vweird.f32 %v1763_v49 }
 0x55a   : > { %v1316_v38 = vmul.f32 %v1761_v36, %v1315_v37 }
 0x55b   : > { %v1373_v51 = vsub.f32 1.0, %v1372_v50 }
 0x55c   : > { %v1317_v39 = vmul.f32 0.5, %v1316_v38 }
 0x55d   : > { %v1374_v52 = vmul.f32 %v1763_v49, %v1373_v51 }
 0x55e   : > { %v1318_v40 = vsub.f32 1.5, %v1317_v39 }
 0x55f   : > { %v1375_v53 = vadd.f32 %v1763_v49, %v1374_v52 }
 0x560   : > { %v1319_v41 = vmul.f32 %v1761_v36, %v1318_v40 }
 0x561   : > { %v1377_v56 = vsel %vm1376_vm10, %v1763_v49, %v1375_v53 }
 0x562   : > { %v1323_v43 = vsel %vm1322_vm9, %v1761_v36, %v1319_v41  ;;  %v1739_v36 = vld [vmem:[%s2137_s16] ss:$0 sm:$0xff] }
 0x563   : > { %v1324_v44 = vmul.f32 %v1323_v43, %v1307_v29 }
 0x565   : > { %v1328_v45 = vmul.f32 %v1736_v42, %v1324_v44 }
 0x567   : > { %v1332_v46 = vadd.f32 %v1737_v8, %v1328_v45 }
 0x569   : > { %v1333_v47 = vpack.c.bf16 %v1332_v46, %v1332_v46 }
 0x56b   : > { %1661 = vmatmul.msk.bf16.vlgmr.msra.gmra.mxu0 %vm548_vm0, %v1333_v47 }
 0x5e8   : > { %v1366_v55 = vpop.f32.mrf.mxu0 }
 0x5e9   : > { %v1367_v57 = vadd.f32 %v1738_v54, %v1366_v55 }
 0x5eb   : > { %v1378_v58 = vmul.f32 %v1377_v56, %v1367_v57  ;;  %v1370_v32 = vmul.f32 0.5, %v1367_v57 }
 0x5ed   : > { %v1379_v59 = vand.u32 2147483647, %v1378_v58  ;;  %vm1412_vm15 = vcmp.ge.f32.partialorder %v1378_v58, 0.0 }
 0x5ef   : > { %v1380_v60 = vmul.f32 0.3275911, %v1379_v59  ;;  %v1406_v15 = vsub.f32 0.0, %v1379_v59 }
 0x5f0   : > { %v1368_v61 = vpop.f32.mrf.mxu0 }
 0x5f1   : > { %v1381_v62 = vadd.f32 1.0, %v1380_v60  ;;  %v1407_v18 = vmul.f32 %v1406_v15, %v1379_v59 }
 0x5f3   : > { %1764 = vrcp.f32 %v1381_v62  ;;  %v1393_v6 = vand.u32 2147483648, %v1381_v62  ;;  %v1391_v9 = vand.u32 2147483647, %v1381_v62  ;;  %vm1387_vm12 = vweird.f32 %v1381_v62 }
 0x5f4   : > { %v1408_v21 = vmul.f32 1.442695, %v1407_v18 }
 0x5f5   : > { %v1394_v12 = vor.u32 1.1754944e-38, %v1393_v6  ;;  %vm1392_vm14 = vcmp.eq.f32.partialorder %v1391_v9, 8.507059e+37 }
 0x5f6   : > { %1766 = vpow2.f32 %v1408_v21 }
 0x5f9   : > { %v1765_v2 = vpop.eup %1764 }
 0x5fa   : > { %v1383_v3 = vmul.f32 %v1765_v2, %v1381_v62  ;;  %vm1388_vm11 = vweird.f32 %v1765_v2 }
 0x5fb   : > { %vm1389_vm13 = vmor %vm1387_vm12, %vm1388_vm11 }
 0x5fc   : > { %v1384_v5 = vsub.f32 1.0, %v1383_v3  ;;  %v1767_v28 = vpop.eup %1766 }
 0x5fe   : > { %v1385_v7 = vmul.f32 %v1765_v2, %v1384_v5 }
 0x600   : > { %v1386_v11 = vadd.f32 %v1765_v2, %v1385_v7 }
 0x602   : > { %v1390_v13 = vsel %vm1389_vm13, %v1765_v2, %v1386_v11 }
 0x603   : > { %v1395_v14 = vsel %vm1392_vm14, %v1394_v12, %v1390_v13 }
 0x604   : > { %v1397_v16 = vmul.f32 1.0614054, %v1395_v14 }
 0x606   : > { %v1398_v17 = vadd.f32 -1.4531521, %v1397_v16 }
 0x608   : > { %v1399_v19 = vmul.f32 %v1398_v17, %v1395_v14 }
 0x60a   : > { %v1400_v20 = vadd.f32 1.4214138, %v1399_v19 }
 0x60c   : > { %v1401_v22 = vmul.f32 %v1400_v20, %v1395_v14 }
 0x60e   : > { %v1402_v23 = vadd.f32 -0.28449672, %v1401_v22 }
 0x610   : > { %v1403_v25 = vmul.f32 %v1402_v23, %v1395_v14 }
 0x612   : > { %v1404_v26 = vadd.f32 0.2548296, %v1403_v25 }
 0x614   : > { %v1405_v27 = vmul.f32 %v1404_v26, %v1395_v14 }
 0x616   : > { %v1410_v29 = vmul.f32 %v1767_v28, %v1405_v27 }
 0x618   : > { %v1411_v30 = vsub.f32 1.0, %v1410_v29 }
 0x61a   : > { %v1413_v31 = vsub.f32 0.0, %v1411_v30 }
 0x61c   : > { %v1414_v0 = vsel %vm1412_vm15, %v1411_v30, %v1413_v31 }
 0x61d   : > { %v1415_v33 = vadd.f32 1.0, %v1414_v0 }
 0x61f   : > { %v1416_v34 = vmul.f32 %v1415_v33, %v1370_v32 }
 0x621   : > { %v1417_v35 = vpack.c.bf16 %v1416_v34, %v1416_v34 }
 0x623   : > { %1678 = vmatmul.msk.bf16.vlgmr.msra.gmra.mxu1 %vm1454_vm1, %v1417_v35 }
 0x6a0   : > { %v1467_v37 = vpop.f32.mrf.mxu1 }
 0x6a1   : > { %v1468_v38 = vadd.f32 %v1739_v36, %v1467_v37 }
 0x6a3   : > { %v1471_v39 = vadd.f32 %v1468_v38, %v2072_v24 }
 0x6a5   : > { %1472 = vst.msk [vmem:[%s543_s18] sm:$0xff] %vm548_vm0, %v1471_v39 }
 0x6a8   : > { %v1469_v40 = vpop.f32.mrf.mxu1 }
 0x6a9 PF: > { %s27_s24 = sadd.s32 1, %s1774_s24  }
 0x6aa   : > { %p24_p4 = scmp.ge.s32.totalorder %s27_s24, 4  }
 0x6ac   :  { %26 = sbr.rel (!%p24_p4) target bundleno = 3 (0x3), region = 118 }

</bundles_post_ra>
